<compile_context>
chip_gen: v6e
topology: v6e:2x2x1
jax: 0.10.0
libtpu: 0.0.40
codegen_flags: <defaults>
</compile_context>

<pallas_src>
import functools
import math

import jax
import jax.numpy as jnp
from jax import lax
from jax.experimental import pallas as pl
from jax.experimental.pallas import tpu as pltpu


def _round_up(v: int, m: int) -> int:
    return ((v + m - 1) // m) * m


# ---------------------------------------------------------------------------
# Forward: y = tanh(x)
# ---------------------------------------------------------------------------

_LANE_CANDIDATES = (1024, 512, 256, 128)
_FWD_BLOCK_BYTES = 4 << 20      # ~4 MiB per block, in+out double-buffered = 16 MiB
_FWD_VMEM_LIMIT = 32 << 20      # explicit (raises v5e's 16 MiB scoped default)


def _tanh_kernel(x_ref, o_ref, *, compute_dtype):
    o_ref[...] = jnp.tanh(x_ref[...].astype(compute_dtype)).astype(o_ref.dtype)


def _row_tile(rows: int, target_rows: int) -> int:
    """Row-block size: multiple of 8 (or full extent for tiny inputs); aims for
    >= 2 grid steps whenever there is enough work (keeps both v7x TCs busy)."""
    if rows <= 8:
        return rows                                  # single full-extent block
    if rows < 2 * target_rows:
        return max(8, _round_up(pl.cdiv(rows, 2), 8))
    return target_rows


def _tanh_2d(x2: jax.Array, tile_rows: int, compute_dtype) -> jax.Array:
    rows, lane = x2.shape
    return pl.pallas_call(
        functools.partial(_tanh_kernel, compute_dtype=compute_dtype),
        out_shape=jax.ShapeDtypeStruct((rows, lane), x2.dtype),
        grid=(pl.cdiv(rows, tile_rows),),
        in_specs=[pl.BlockSpec((tile_rows, lane), lambda i: (i, 0))],
        out_specs=pl.BlockSpec((tile_rows, lane), lambda i: (i, 0)),
        compiler_params=pltpu.CompilerParams(
            dimension_semantics=("parallel",),
            vmem_limit_bytes=_FWD_VMEM_LIMIT,
        ),
    )(x2)


def tanh2d_forward(x: jax.Array) -> jax.Array:
    """Elementwise tanh, shape/dtype preserving (any rank)."""
    orig_shape = x.shape
    n = x.size
    itemsize = x.dtype.itemsize
    # bf16 stays bf16 (v6e/v7x have a bf16 EUP path; on v5e the compiler
    # inserts conversions); everything else computed in f32.
    compute_dtype = jnp.bfloat16 if x.dtype == jnp.bfloat16 else jnp.float32

    lane = next((L for L in _LANE_CANDIDATES if n % L == 0), None)

    if lane is not None:
        # Common (128-aligned) case: a plain reshape -- no HBM copies.
        rows = n // lane
        target_rows = max(8, _FWD_BLOCK_BYTES // (lane * itemsize))
        tile_rows = _row_tile(rows, target_rows)
        y2 = _tanh_2d(x.reshape(rows, lane), tile_rows, compute_dtype)
        return y2.reshape(orig_shape)

    # Fallback for sizes not divisible by 128: pad (one extra HBM round trip).
    lane = 1024
    total = _round_up(n, lane)
    rows = total // lane
    target_rows = max(8, _FWD_BLOCK_BYTES // (lane * itemsize))
    tile_rows = _row_tile(rows, target_rows)
    xf = jnp.pad(jnp.ravel(x), (0, total - n)).reshape(rows, lane)
    y2 = _tanh_2d(xf, tile_rows, compute_dtype)
    return y2.reshape(-1)[:n].reshape(orig_shape)


# ---------------------------------------------------------------------------
# Hamilton: sum(tanh(x) * lambd, dim=(1,2,3))  -- fused multiply + reduce
# ---------------------------------------------------------------------------

_HAM_BATCH_TILE = 256
_HAM_FEAT_TILE = 4096           # 256x4096xf32 = 4 MiB/input block
_HAM_VMEM_LIMIT = 32 << 20


def _hamilton_kernel(x_ref, l_ref, o_ref, acc_ref, *,
                     F, tf, steps_per_chunk, lane_acc, need_mask):
    c = pl.program_id(1)            # feature-chunk index (parallel)
    j = pl.program_id(2)            # reduction step within the chunk

    @pl.when(j == 0)
    def _():
        acc_ref[...] = jnp.zeros_like(acc_ref)

    prod = (jnp.tanh(x_ref[...].astype(jnp.float32))
            * l_ref[...].astype(jnp.float32))

    if need_mask:
        # Zero out the out-of-range feature columns of the ragged last block.
        gj = c * steps_per_chunk + j
        col = gj * tf + lax.broadcasted_iota(jnp.int32, prod.shape, 1)
        prod = jnp.where(col < F, prod, 0.0)

    if lane_acc:
        # Lane-parallel accumulation: only VPU adds per step; the 128->1
        # cross-lane (XLU) reduce is deferred to the final step.
        part = prod[:, 0:128]
        for k in range(1, tf // 128):
            part = part + prod[:, k * 128:(k + 1) * 128]
        acc_ref[...] += part
    else:
        acc_ref[...] += prod.sum(axis=1, keepdims=True)

    @pl.when(j == steps_per_chunk - 1)
    def _():
        if lane_acc:
            o_ref[0] = acc_ref[...].sum(axis=1, keepdims=True)
        else:
            o_ref[0] = acc_ref[...]


def hamilton(x: jax.Array, lambd: jax.Array) -> jax.Array:
    """Per-batch sum of tanh(x) * lambd over all non-batch dims."""
    # TODO(synk): broadcasting of a reduced-shape lambd is not supported.
    if x.shape != lambd.shape:
        raise ValueError("hamilton expects lambd with the same shape as x")
    B = x.shape[0]
    F = math.prod(x.shape[1:])

    x2 = x.reshape(B, F)            # free reshape for contiguous inputs
    l2 = lambd.reshape(B, F)

    tb = B if B <= _HAM_BATCH_TILE else _HAM_BATCH_TILE
    grid_b = pl.cdiv(B, tb)

    tf = F if F <= _HAM_FEAT_TILE else _HAM_FEAT_TILE
    grid_f = pl.cdiv(F, tf)
    need_mask = (F % tf) != 0
    lane_acc = (tf % 128) == 0
    acc_w = 128 if lane_acc else 1

    # Small batch (single batch tile): split the reduction over 2 feature
    # chunks (each with its own partial-output column) so v7x's second
    # TensorCore has a parallel grid step; neutral on single-TC v5e/v6e.
    n_chunks = 2 if (grid_b == 1 and grid_f >= 2 and grid_f % 2 == 0) else 1
    spc = grid_f // n_chunks

    feat_map = lambda i, c, j: (i, c * spc + j)

    out = pl.pallas_call(
        functools.partial(_hamilton_kernel, F=F, tf=tf, steps_per_chunk=spc,
                          lane_acc=lane_acc, need_mask=need_mask),
        out_shape=jax.ShapeDtypeStruct((n_chunks, B, 1), jnp.float32),
        grid=(grid_b, n_chunks, spc),
        in_specs=[pl.BlockSpec((tb, tf), feat_map),
                  pl.BlockSpec((tb, tf), feat_map)],
        out_specs=pl.BlockSpec((1, tb, 1), lambda i, c, j: (c, i, 0)),
        scratch_shapes=[pltpu.VMEM((tb, acc_w), jnp.float32)],
        compiler_params=pltpu.CompilerParams(
            dimension_semantics=("parallel", "parallel", "arbitrary"),
            vmem_limit_bytes=_HAM_VMEM_LIMIT,
        ),
    )(x2, l2)

    # Tiny wrapper-side combine of the per-chunk partials.
    return out[:, :, 0].sum(axis=0).astype(x.dtype)


if __name__ == "__main__":
    key = jax.random.PRNGKey(0)
    kx, kl, k2, k3, k4 = jax.random.split(key, 5)

    # Conv-net style input: batch=2, channels=4, spatial=16x16 (128-aligned).
    x = jax.random.normal(kx, (2, 4, 16, 16), dtype=jnp.float32)
    lambd = jax.random.normal(kl, (2, 4, 16, 16), dtype=jnp.float32)

    # Forward: elementwise tanh (aligned, zero-copy wrapper path).
    y = tanh2d_forward(x)
    jax.block_until_ready(y)
    assert y.shape == x.shape and y.dtype == x.dtype
    assert jnp.allclose(y, jnp.tanh(x), atol=1e-6), "forward mismatch"

    # Hamilton: fused tanh * lambd reduction over (C, H, W).
    h = hamilton(x, lambd)
    jax.block_until_ready(h)
    ref_h = jnp.sum(jnp.tanh(x) * lambd, axis=(1, 2, 3))
    assert h.shape == (2,)
    assert jnp.allclose(h, ref_h, atol=1e-4, rtol=1e-5), "hamilton mismatch"

    # Extra coverage of the ragged / multi-block paths (still small shapes):
    #  * forward with a ragged row grid (aligned size, rows % tile != 0).
    xr = jax.random.normal(k2, (3, 3, 16, 64), dtype=jnp.float32)
    yr = tanh2d_forward(xr)
    jax.block_until_ready(yr)
    assert jnp.allclose(yr, jnp.tanh(xr), atol=1e-6), "ragged forward mismatch"

    #  * forward with a 128-unaligned size (padded fallback).
    xu = jax.random.normal(k3, (3, 5, 7, 11), dtype=jnp.float32)
    yu = tanh2d_forward(xu)
    jax.block_until_ready(yu)
    assert jnp.allclose(yu, jnp.tanh(xu), atol=1e-6), "unaligned forward mismatch"

    #  * hamilton with F > feature tile, ragged last feature block, and the
    #    two-chunk parallel split (small batch).
    xb = jax.random.normal(k4, (4, 8, 30, 30), dtype=jnp.float32)
    lb = jax.random.normal(jax.random.PRNGKey(7), (4, 8, 30, 30),
                           dtype=jnp.float32)
    hb = hamilton(xb, lb)
    jax.block_until_ready(hb)
    ref_hb = jnp.sum(jnp.tanh(xb) * lb, axis=(1, 2, 3))
    assert jnp.allclose(hb, ref_hb, atol=1e-3, rtol=1e-5), "big hamilton mismatch"

    print("KERNEL_OK")
</pallas_src>

<mosaic_0001>
module attributes {stable_mosaic.version = 11 : i64} {
  func.func @_tanh_kernel(%arg0: i32, %arg1: memref<2x1024xf32, #tpu.memory_space<vmem>>, %arg2: memref<2x1024xf32, #tpu.memory_space<vmem>>) attributes {dimension_semantics = [#tpu.dimension_semantics<parallel>], iteration_bounds = array<i64: 1>, scalar_prefetch = 0 : i64, scratch_operands = 0 : i64, tpu.core_type = #tpu.core_type<tc>, window_params = [{transform_indices = @transform_0, window_bounds = array<i64: 2, 1024>}, {transform_indices = @transform_1, window_bounds = array<i64: 2, 1024>}]} {
    %c0 = arith.constant 0 : index
    %c0_0 = arith.constant 0 : index
    %0 = vector.load %arg1[%c0, %c0_0] : memref<2x1024xf32, #tpu.memory_space<vmem>>, vector<2x1024xf32>
    %1 = math.tanh %0 : vector<2x1024xf32>
    %c0_1 = arith.constant 0 : index
    %c0_2 = arith.constant 0 : index
    %2 = vector.load %arg2[%c0_1, %c0_2] : memref<2x1024xf32, #tpu.memory_space<vmem>>, vector<2x1024xf32>
    tpu.vector_store %arg2[%c0_1, %c0_2], %1 {strides = array<i32>} : memref<2x1024xf32, #tpu.memory_space<vmem>>, vector<2x1024xf32>,
    return
  }
  func.func @transform_0(%arg0: i32) -> (i32, i32) {
    %c0_i32 = arith.constant 0 : i32
    %c0_i32_0 = arith.constant 0 : i32
    return %arg0, %c0_i32 : i32, i32
  }
  func.func @transform_1(%arg0: i32) -> (i32, i32) {
    %c0_i32 = arith.constant 0 : i32
    %c0_i32_0 = arith.constant 0 : i32
    return %arg0, %c0_i32 : i32, i32
  }
}

</mosaic_0001>

<bundles_post_ra>
// kernel: tpu_custom_call.1
= control target key start
LH: loop header
LB: loop body
LE: loop exit
PB: predicated region body
PF: predicated region fallthrough
CT: control target
= control target key end

     0   :  { %6 = vsyncpa [#allocation3], 0  ;;  %s110_s0 = inlined_call_operand.hbm [shape: f32[2,1024], index: 0, kind: input, shape index: {}]   ;;  %s111_s1 = inlined_call_operand.hbm [shape: f32[2,1024], index: 1, kind: output, shape index: {}]  }
   0x1   :  { %7 = vsyncpa [#allocation4], 0  ;;  %s92_s6 = smov [#allocation2]  }
   0x2   :  { %s14_s7 = sshll.u32 %s92_s6, 4  ;;  %s15_s7 = int_to_ptr.vmem [resolvable:$true] %s14_s7 }
   0x3   :  { %s56_s8 = scalar_lea.vmem %s15_s7, 256  ;;  %p61_p1 = scmp.lt.s32.totalorder %s15_s7, %s15_s7 }
   0x4   :  { %p57_p0 = scmp.ne.s32.totalorder %s15_s7, %s56_s8  ;;  %p62_p2 = scmp.lt.s32.totalorder %s56_s8, %s56_s8 }
   0x6   :  { %p63_p3 = por %p62_p2, %p61_p1 }
   0x8   :  { %p64_p4 = pnand %p63_p3, %p57_p0 }
   0xa   :  { %67 = shalt.err (!%p64_p4)
}
   0xb   :  { %17 = dma.hbm_to_vmem [thread:$0]  %s110_s0, 256, %s15_s7, [#allocation3]  }
   0xc   :  { %88 = dma.done.wait [#allocation3], 256  }
   0xd   :  { %89 = vsyncadd [#allocation3], 4294967040  ;;  %v21_v0 = vld [vmem:[#allocation2] sm:$0xff]  ;;  %v22_v1 = vld [vmem:[#allocation2 + $0x8] sm:$0xff]  ;;  %s93_s11 = smov [#allocation5]  }
   0xe   :  { %44 = vtanh.f32 %v21_v0  ;;  %s33_s12 = sshll.u32 %s93_s11, 4  ;;  %s34_s12 = int_to_ptr.vmem [resolvable:$true] %s33_s12 }
   0xf   :  { %46 = vtanh.f32 %v22_v1  ;;  %s68_s13 = scalar_lea.vmem %s34_s12, 256  ;;  %p73_p6 = scmp.lt.s32.totalorder %s34_s12, %s34_s12 }
  0x10   :  { %p69_p5 = scmp.ne.s32.totalorder %s34_s12, %s68_s13  ;;  %p74_p7 = scmp.lt.s32.totalorder %s68_s13, %s68_s13 }
  0x12   :  { %p75_p8 = por %p74_p7, %p73_p6 }
  0x14   :  { %p76_p9 = pnand %p75_p8, %p69_p5 }
  0x1b   :  { %v45_v2 = vpop.eup %44 }
  0x1c   :  { %v47_v3 = vpop.eup %46  ;;  %25 = vst [vmem:[#allocation5] sm:$0xff] %v45_v2 }
  0x1d   :  { %26 = vst [vmem:[#allocation5 + $0x8] sm:$0xff] %v47_v3 }
  0x1e   :  { %79 = shalt.err (!%p76_p9)
}
  0x1f   :  { %36 = dma.vmem_to_hbm [thread:$0]  %s34_s12, 256, %s111_s1, [#allocation4]  }
  0x20   :  { %90 = dma.done.wait [#allocation4], 256  }
  0x21   :  { %91 = vsyncadd [#allocation4], 4294967040 }
  0x22   :  { %40 = vsyncpa [#allocation3], 1 }
  0x23   :  { %41 = vsyncpa [#allocation4], 1 }

</bundles_post_ra>
